<compile_context>
chip_gen: v5e
topology: v5e:2x2
jax: 0.10.0
libtpu: 0.0.40
codegen_flags: <defaults>
</compile_context>

<pallas_src>
import functools

import jax
import jax.numpy as jnp
from jax.experimental import pallas as pl
from jax.experimental.pallas import tpu as pltpu

LANE = 128


def _dual_tensorcore_device() -> bool:
    """True on chips with 2 TensorCores per device (v4/v5p megacore, v7x)."""
    try:
        kind = jax.devices()[0].device_kind.lower()
    except Exception:
        return False
    return any(tag in kind for tag in ("v7", "7x", "v4", "v5p"))


def _linex_kernel(yhat_ref, y_ref, out_ref, *, a, chunk, n_chunks, chunk_tail,
                  n_valid_tiles, steps, gate):
    """One grid step: sum of (exp(a*delta) - a*delta - 1) over a (tm, 128)
    input tile, reduced into the resident (8, 128) accumulator block.

    The constant factor b = 2/a**2 and the 1/N of the mean are applied once on
    the final scalar in the wrapper.  Every block the grid indexes is fully
    in-bounds, so no per-element masking is needed."""
    c = pl.program_id(0)   # TensorCore split  ("parallel")
    i = pl.program_id(1)   # tile step         ("arbitrary")

    @pl.when(i == 0)
    def _init():
        out_ref[...] = jnp.zeros_like(out_ref)

    def accum_rows(r0, nrows):
        # Cast-on-load; all math in f32 on the VPU (exp goes to the EUP slot).
        yh = yhat_ref[pl.ds(r0, nrows), :].astype(jnp.float32)
        yy = y_ref[pl.ds(r0, nrows), :].astype(jnp.float32)
        d = yy - yh
        ad = d if a == 1.0 else a * d
        vals = jnp.exp(ad) - ad - 1.0
        # (nrows,128) -> (nrows//8, 8, 128) keeps the native (8,128) tiles
        # intact, so the axis-0 sum is pure VPU adds into one vreg-row.
        out_ref[...] += vals.reshape(nrows // 8, 8, LANE).sum(axis=0)

    def compute():
        if n_chunks == 1 and chunk_tail == 0:
            accum_rows(0, chunk)
        else:
            # Chunk the compute so full-tile f32 temporaries never materialize
            # (keeps VMEM use low even with large DMA tiles).
            @pl.loop(0, n_chunks)
            def _(k):
                accum_rows(pl.multiple_of(k * chunk, chunk), chunk)
            if chunk_tail > 0:
                accum_rows(n_chunks * chunk, chunk_tail)

    if gate:
        # Odd tile count split over 2 cores: the clamped duplicate tile is
        # DMA'd but must not be accumulated.
        @pl.when(c * steps + i < n_valid_tiles)
        def _():
            compute()
    else:
        compute()


def linex_loss(y_hat, y, a=1.0, *, _tm_rows=None, _split=None):
    """Pallas TPU implementation of LinexLoss.forward (returns the mean loss).

    `_tm_rows` / `_split` are test-only overrides for the tile size and the
    TensorCore split."""
    assert a != 0, "a should not be set to 0"
    a = float(a)
    b = 2.0 / (a ** 2)

    y_hat = jnp.asarray(y_hat)
    y = jnp.asarray(y)
    assert y_hat.shape == y.shape, "y_hat and y must have the same shape"
    if y_hat.dtype != y.dtype:
        ct = jnp.promote_types(y_hat.dtype, y.dtype)
        y_hat = y_hat.astype(ct)
        y = y.astype(ct)

    total = int(y_hat.size)
    assert total > 0

    flat_yhat = y_hat.reshape(-1)
    flat_y = y.reshape(-1)

    itemsize = jnp.dtype(y_hat.dtype).itemsize
    sub = 8 * max(1, 4 // itemsize)        # sublane multiple: f32->8, bf16->16
    rows_total = total // LANE
    lane_rem = total - rows_total * LANE

    # ~4 MiB of input bytes per operand per tile (~8 MiB streamed per step):
    # amortizes the ~0.35 us grid-step overhead on every generation while the
    # double-buffered inputs stay ~16 MiB (well inside v7x's 64 MiB VMEM).
    tm_target = (4 * 1024 * 1024) // (LANE * itemsize)   # 8192 f32, 16384 bf16

    if rows_total >= sub:
        if _tm_rows is not None:
            tm = min((int(_tm_rows) // sub) * sub, (rows_total // sub) * sub)
            tm = max(tm, sub)
        else:
            n_split = -(-rows_total // tm_target)          # cdiv >= 1
            tm = ((rows_total // n_split) // sub) * sub    # balanced, aligned
        n_full = rows_total // tm
    else:
        tm, n_full = 0, 0
    rows_main = n_full * tm

    main_sum = jnp.float32(0.0)
    if n_full > 0:
        if lane_rem == 0:
            # Free reshape of the full array; the grid only touches the first
            # n_full fully-in-bounds (tm, 128) blocks.
            yhat2d = flat_yhat.reshape(rows_total, LANE)
            y2d = flat_y.reshape(rows_total, LANE)
        else:
            # Rare lane-unaligned case: slice the aligned prefix only.
            need = rows_main * LANE
            yhat2d = flat_yhat[:need].reshape(rows_main, LANE)
            y2d = flat_y[:need].reshape(rows_main, LANE)

        if _split is not None:
            dual = int(_split) >= 2
        else:
            dual = _dual_tensorcore_device()
        n_cores = 2 if (dual and n_full >= 2) else 1
        steps = -(-n_full // n_cores)                      # cdiv
        gate = (n_cores * steps != n_full)                 # odd-tile duplicate

        chunk = min(tm, 1024)
        n_chunks = tm // chunk
        chunk_tail = tm - n_chunks * chunk                 # multiple of `sub`

        def in_map(c, i):
            t = c * steps + i
            if gate:
                # Clamp so the duplicated step never issues an OOB DMA; its
                # accumulation is skipped inside the kernel.
                t = jnp.minimum(t, n_full - 1)
            return (t, 0)

        kernel = functools.partial(
            _linex_kernel, a=a, chunk=chunk, n_chunks=n_chunks,
            chunk_tail=chunk_tail, n_valid_tiles=n_full, steps=steps, gate=gate)

        partial = pl.pallas_call(
            kernel,
            out_shape=jax.ShapeDtypeStruct((n_cores * 8, LANE), jnp.float32),
            grid_spec=pltpu.PrefetchScalarGridSpec(
                num_scalar_prefetch=0,
                grid=(n_cores, steps),
                in_specs=[
                    pl.BlockSpec((tm, LANE), in_map),
                    pl.BlockSpec((tm, LANE), in_map),
                ],
                out_specs=pl.BlockSpec((8, LANE), lambda c, i: (c, 0)),
            ),
            compiler_params=pltpu.CompilerParams(
                dimension_semantics=("parallel", "arbitrary"),
                vmem_limit_bytes=40 * 1024 * 1024,
            ),
        )(yhat2d, y2d)
        main_sum = jnp.sum(partial)          # <= 2048 f32 values

    # Ragged remainder (rows past the last full tile + the <128-element lane
    # tail): <~0.1% of the data, finished with plain jnp.
    tail_sum = jnp.float32(0.0)
    if rows_main * LANE < total:
        ty_hat = flat_yhat[rows_main * LANE:].astype(jnp.float32)
        ty = flat_y[rows_main * LANE:].astype(jnp.float32)
        td = ty - ty_hat
        tad = td if a == 1.0 else a * td
        tail_sum = jnp.sum(jnp.exp(tad) - tad - 1.0)

    # b and the 1/N of the mean are applied once, on the final scalar.
    return (main_sum + tail_sum) * (b / total)


def linex_loss_ref(y_hat, y, a=1.0):
    b = 2.0 / (a ** 2)
    delta = y.astype(jnp.float32) - y_hat.astype(jnp.float32)
    return jnp.mean(b * (jnp.exp(a * delta) - a * delta - 1.0))


if __name__ == "__main__":
    key = jax.random.PRNGKey(0)
    k1, k2, k3, k4 = jax.random.split(key, 4)

    # 1) Small forecasting-style output (batch, horizon, h, w): single-tile path.
    shape = (2, 4, 16, 16)
    y_hat = jax.random.normal(k1, shape, dtype=jnp.float32)
    y = jax.random.normal(k2, shape, dtype=jnp.float32)
    out = jax.block_until_ready(linex_loss(y_hat, y, a=1.0))
    ref = linex_loss_ref(y_hat, y, a=1.0)
    assert jnp.allclose(out, ref, rtol=1e-5, atol=1e-5), (out, ref)

    # 2) Negative `a` on a lane-unaligned tiny size (jnp remainder path).
    shape2 = (3, 5, 7)
    y_hat2 = jax.random.normal(k3, shape2, dtype=jnp.float32)
    y2 = jax.random.normal(k4, shape2, dtype=jnp.float32)
    out2 = jax.block_until_ready(linex_loss(y_hat2, y2, a=-0.5))
    ref2 = linex_loss_ref(y_hat2, y2, a=-0.5)
    assert jnp.allclose(out2, ref2, rtol=1e-5, atol=1e-5), (out2, ref2)

    # 3) bf16 inputs: exercises the in-kernel chunk loop, the static tail chunk
    #    and the small jnp row-remainder.
    shape3 = (2, 1500, 128)
    y_hat3 = jax.random.normal(k1, shape3, dtype=jnp.bfloat16)
    y3 = jax.random.normal(k2, shape3, dtype=jnp.bfloat16)
    out3 = jax.block_until_ready(linex_loss(y_hat3, y3, a=1.0))
    ref3 = linex_loss_ref(y_hat3, y3, a=1.0)
    assert jnp.allclose(out3, ref3, rtol=2e-3, atol=2e-3), (out3, ref3)

    # 4) Forced small tiles + forced 2-way split with an odd tile count:
    #    exercises the clamped index_map and the duplicate-tile pl.when gate.
    shape4 = (8, 64, 32)
    y_hat4 = jax.random.normal(k3, shape4, dtype=jnp.float32)
    y4 = jax.random.normal(k4, shape4, dtype=jnp.float32)
    out4 = jax.block_until_ready(
        linex_loss(y_hat4, y4, a=0.5, _tm_rows=40, _split=2))
    ref4 = linex_loss_ref(y_hat4, y4, a=0.5)
    assert jnp.allclose(out4, ref4, rtol=1e-5, atol=1e-5), (out4, ref4)

    print("KERNEL_OK")
</pallas_src>

<mosaic_0001>
module attributes {stable_mosaic.version = 11 : i64} {
  func.func @_linex_kernel(%arg0: i32, %arg1: i32, %arg2: memref<16x128xf32, #tpu.memory_space<vmem>>, %arg3: memref<16x128xf32, #tpu.memory_space<vmem>>, %arg4: memref<8x128xf32, #tpu.memory_space<vmem>>) attributes {dimension_semantics = [#tpu.dimension_semantics<parallel>, #tpu.dimension_semantics<arbitrary>], iteration_bounds = array<i64: 1, 1>, scalar_prefetch = 0 : i64, scratch_operands = 0 : i64, tpu.core_type = #tpu.core_type<tc>, window_params = [{transform_indices = @transform_0, window_bounds = array<i64: 16, 128>}, {transform_indices = @transform_1, window_bounds = array<i64: 16, 128>}, {transform_indices = @transform_2, window_bounds = array<i64: 8, 128>}]} {
    %c0_i32 = arith.constant 0 : i32
    %0 = arith.cmpi eq, %arg1, %c0_i32 : i32
    %1 = arith.extui %0 : i1 to i32
    %c0_i32_0 = arith.constant 0 : i32
    %2 = arith.cmpi ne, %1, %c0_i32_0 : i32
    scf.if %2 {
      %cst_9 = arith.constant 0.000000e+00 : f32
      %15 = vector.broadcast %cst_9 : f32 to vector<8x128xf32>
      %c0_10 = arith.constant 0 : index
      %c0_11 = arith.constant 0 : index
      %16 = vector.load %arg4[%c0_10, %c0_11] : memref<8x128xf32, #tpu.memory_space<vmem>>, vector<8x128xf32>
      tpu.vector_store %arg4[%c0_10, %c0_11], %15 {strides = array<i32>} : memref<8x128xf32, #tpu.memory_space<vmem>>, vector<8x128xf32>,
    } else {
    }
    %c0 = arith.constant 0 : index
    %c0_1 = arith.constant 0 : index
    %3 = vector.load %arg2[%c0, %c0_1] : memref<16x128xf32, #tpu.memory_space<vmem>>, vector<16x128xf32>
    %c0_2 = arith.constant 0 : index
    %c0_3 = arith.constant 0 : index
    %4 = vector.load %arg3[%c0_2, %c0_3] : memref<16x128xf32, #tpu.memory_space<vmem>>, vector<16x128xf32>
    %5 = arith.subf %4, %3 : vector<16x128xf32>
    %6 = math.exp %5 : vector<16x128xf32>
    %7 = arith.subf %6, %5 : vector<16x128xf32>
    %cst = arith.constant 1.000000e+00 : f32
    %8 = vector.broadcast %cst : f32 to vector<16x128xf32>
    %9 = arith.subf %7, %8 : vector<16x128xf32>
    %c0_4 = arith.constant 0 : index
    %c0_5 = arith.constant 0 : index
    %10 = vector.load %arg4[%c0_4, %c0_5] : memref<8x128xf32, #tpu.memory_space<vmem>>, vector<8x128xf32>
    %11 = vector.shape_cast %9 : vector<16x128xf32> to vector<2x8x128xf32>
    %cst_6 = arith.constant dense<0.000000e+00> : vector<8x128xf32>
    %12 = vector.multi_reduction <add>, %11, %cst_6 [0] : vector<2x8x128xf32> to vector<8x128xf32>
    %13 = arith.addf %10, %12 : vector<8x128xf32>
    %c0_7 = arith.constant 0 : index
    %c0_8 = arith.constant 0 : index
    %14 = vector.load %arg4[%c0_7, %c0_8] : memref<8x128xf32, #tpu.memory_space<vmem>>, vector<8x128xf32>
    tpu.vector_store %arg4[%c0_7, %c0_8], %13 {strides = array<i32>} : memref<8x128xf32, #tpu.memory_space<vmem>>, vector<8x128xf32>,
    return
  }
  func.func @transform_0(%arg0: i32, %arg1: i32) -> (i32, i32) {
    %c1_i32 = arith.constant 1 : i32
    %0 = arith.muli %arg0, %c1_i32 : i32
    %1 = arith.addi %0, %arg1 : i32
    %c0_i32 = arith.constant 0 : i32
    %c0_i32_0 = arith.constant 0 : i32
    return %1, %c0_i32 : i32, i32
  }
  func.func @transform_1(%arg0: i32, %arg1: i32) -> (i32, i32) {
    %c1_i32 = arith.constant 1 : i32
    %0 = arith.muli %arg0, %c1_i32 : i32
    %1 = arith.addi %0, %arg1 : i32
    %c0_i32 = arith.constant 0 : i32
    %c0_i32_0 = arith.constant 0 : i32
    return %1, %c0_i32 : i32, i32
  }
  func.func @transform_2(%arg0: i32, %arg1: i32) -> (i32, i32) {
    %c0_i32 = arith.constant 0 : i32
    %c0_i32_0 = arith.constant 0 : i32
    return %arg0, %c0_i32 : i32, i32
  }
}

</mosaic_0001>

<bundles_post_ra>
// kernel: tpu_custom_call.1
= control target key start
LH: loop header
LB: loop body
LE: loop exit
PB: predicated region body
PF: predicated region fallthrough
CT: control target
= control target key end

     0   :  { %7 = vsyncpa [#allocation3], 0  ;;  %s216_s0 = inlined_call_operand.hbm [shape: f32[16,128], index: 0, kind: input, shape index: {}]   ;;  %s217_s1 = inlined_call_operand.hbm [shape: f32[16,128], index: 1, kind: input, shape index: {}]   ;;  %s218_s2 = inlined_call_operand.hbm [shape: f32[8,128], index: 2, kind: output, shape index: {}]  }
   0x1   :  { %8 = vsyncpa [#allocation6], 0 }
   0x2   :  { %9 = vsyncpa [#allocation4], 0  ;;  %s18_s11 = sshll.u32 %s216_s0, 4  ;;  %s187_s12 = smov [#allocation2]   ;;  %s19_s11 = int_to_ptr.hbm [resolvable:$true] %s18_s11 }
   0x3   :  { %s20_s13 = sshll.u32 %s187_s12, 4  ;;  %s35_s16 = sshll.u32 %s217_s1, 4  ;;  %s21_s13 = int_to_ptr.vmem [resolvable:$true] %s20_s13  ;;  %s36_s16 = int_to_ptr.hbm [resolvable:$true] %s35_s16 }
   0x4   :  { %s188_s17 = smov 128   ;;  %s189_s18 = smov 8  }
   0x5   :  { %26 = dma.hbm_to_vmem [thread:$0]  %s19_s11, 256, %s21_s13, [#allocation3], %s188_s17, %s188_s17, %s189_s18  }
   0x6   :  { %s190_s19 = smov [#allocation5]  }
   0x7   :  { %s37_s20 = sshll.u32 %s190_s19, 4  ;;  %s38_s20 = int_to_ptr.vmem [resolvable:$true] %s37_s20 }
   0x8   :  { %43 = dma.hbm_to_vmem [thread:$0]  %s36_s16, 256, %s38_s20, [#allocation6], %s188_s17, %s188_s17, %s189_s18  }
   0x9   :  { %181 = dma.done.wait [#allocation3], 256  }
   0xa   :  { %182 = vsyncadd [#allocation3], 4294967040 }
   0xb   :  { %183 = dma.done.wait [#allocation6], 256  }
   0xc   :  { %184 = vsyncadd [#allocation6], 4294967040  ;;  %v61_v0 = vld [vmem:[#allocation2] sm:$0xff]  ;;  %v62_v1 = vld [vmem:[#allocation2 + $0x8] sm:$0xff]  ;;  %s191_s0 = smov [#allocation7]   ;;  %s86_s23 = sshll.u32 %s218_s2, 4  ;;  %s87_s23 = int_to_ptr.hbm [resolvable:$true] %s86_s23 }
   0xd   :  { %v63_v2 = vld [vmem:[#allocation5] sm:$0xff]  ;;  %v64_v3 = vld [vmem:[#allocation5 + $0x8] sm:$0xff]  ;;  %s84_s1 = sshll.u32 %s191_s0, 4  ;;  %s85_s1 = int_to_ptr.vmem [resolvable:$true] %s84_s1 }
   0xe   :  { %v65_v4 = vsub.f32 %v63_v2, %v61_v0  ;;  %v66_v5 = vsub.f32 %v64_v3, %v62_v1 }
  0x10   :  { %v67_v6 = vmul.f32 1.442695, %v65_v4  ;;  %v69_v7 = vmul.f32 1.442695, %v66_v5 }
  0x12   :  { %105 = vpow2.f32 %v67_v6 }
  0x13   :  { %107 = vpow2.f32 %v69_v7 }
  0x18   :  { %v106_v8 = vpop.eup %105 }
  0x19   :  { %v108_v9 = vpop.eup %107  ;;  %v71_v10 = vsub.f32 %v106_v8, %v65_v4 }
  0x1a   :  { %v72_v11 = vsub.f32 %v108_v9, %v66_v5 }
  0x1b   :  { %v97_v12 = vadd.f32 -1.0, %v71_v10 }
  0x1c   :  { %v98_v13 = vadd.f32 -1.0, %v72_v11 }
  0x1e   :  { %v76_v14 = vadd.f32 %v98_v13, %v97_v12 }
  0x20   :  { %78 = vst [vmem:[#allocation7] sm:$0xff] %v76_v14 }
  0x21   :  { %89 = dma.vmem_to_hbm [thread:$0]  %s85_s1, 128, %s87_s23, [#allocation4]  }
  0x22   :  { %185 = dma.done.wait [#allocation4], 128  }
  0x23   :  { %186 = vsyncadd [#allocation4], 4294967168 }
  0x24   :  { %94 = vsyncpa [#allocation3], 1 }
  0x25   :  { %95 = vsyncpa [#allocation6], 1 }
  0x26   :  { %96 = vsyncpa [#allocation4], 1 }

</bundles_post_ra>
